<compile_context>
chip_gen: v7x
topology: tpu7x:2x2x1
jax: 0.10.0
libtpu: 0.0.40
codegen_flags: <defaults>
</compile_context>

<pallas_src>
import jax
import jax.numpy as jnp
import numpy as np
from jax.experimental import pallas as pl
from jax.experimental.pallas import tpu as pltpu


def _conv_block_kernel(w_ref, x_ref, o_ref):
    # w_ref : (3, Cout, Cin)   weight, tap-major, resident across grid steps
    # x_ref : (Cin, Lin)       one batch's zero-padded input slab (Lin = Lpad + 2)
    # o_ref : (Cout, Lpad)     one batch's output slab (lane-dense, Lpad % 128 == 0)
    L = o_ref.shape[-1]
    acc = jnp.dot(w_ref[0], x_ref[:, 0:L], preferred_element_type=jnp.float32)
    acc = acc + jnp.dot(w_ref[1], x_ref[:, 1:1 + L], preferred_element_type=jnp.float32)
    acc = acc + jnp.dot(w_ref[2], x_ref[:, 2:2 + L], preferred_element_type=jnp.float32)
    # LeakyReLU(0.1) == max(x, 0.1*x)
    o_ref[...] = jnp.maximum(acc, 0.1 * acc).astype(o_ref.dtype)


def conv_block(x, weight, *, compute_dtype=jnp.bfloat16, out_dtype=None):
    """Conv1d(k=3, s=1, p=1, bias=False) + LeakyReLU(0.1).

    x: (B, Cin, L), weight: (Cout, Cin, 3) -> (B, Cout, L).
    compute_dtype: dtype of the matmul operands (accumulation is always f32).
                   Default bf16 (native MXU dtype); pass None to keep f32 operands.
    """
    B, Cin, L = x.shape
    Cout, Cin_w, K = weight.shape
    assert K == 3 and Cin_w == Cin
    out_dtype = x.dtype if out_dtype is None else out_dtype

    # Output length padded to a lane multiple so stores are lane-dense.
    Lpad = pl.cdiv(L, 128) * 128
    Lin = Lpad + 2  # +2 halo columns so taps k=0..2 each see Lpad valid columns

    # Single wrapper pad: conv's left zero column + right zeros up to Lin.
    # (cols: [0]=0, [1..L]=data, [L+1..Lin-1]=0 -> col L+1 is the conv's right pad,
    #  anything beyond only feeds output columns >= L which are sliced off.)
    x_pad = jnp.pad(x, ((0, 0), (0, 0), (1, Lin - L - 1)))      # (B, Cin, Lin)

    # Weight -> (3, Cout, Cin), tap-major (tiny tensor, negligible copy).
    w_taps = jnp.transpose(weight, (2, 0, 1))

    if compute_dtype is not None:
        x_pad = x_pad.astype(compute_dtype)
        w_taps = w_taps.astype(compute_dtype)

    flops = 2 * B * Cout * Cin * 3 * Lpad
    bytes_accessed = (
        x_pad.size * x_pad.dtype.itemsize
        + w_taps.size * w_taps.dtype.itemsize
        + B * Cout * Lpad * np.dtype(out_dtype).itemsize
    )

    out = pl.pallas_call(
        _conv_block_kernel,
        out_shape=jax.ShapeDtypeStruct((B, Cout, Lpad), out_dtype),
        grid=(B,),
        in_specs=[
            # Weight: full tensor, resident across all grid steps.
            pl.BlockSpec((3, Cout, Cin), lambda b: (0, 0, 0)),
            # Input: one batch's full padded slab per grid step (batch dim squeezed).
            pl.BlockSpec((None, Cin, Lin), lambda b: (b, 0, 0)),
        ],
        out_specs=pl.BlockSpec((None, Cout, Lpad), lambda b: (b, 0, 0)),
        compiler_params=pltpu.CompilerParams(
            dimension_semantics=("parallel",),   # batches are independent (megacore)
        ),
        cost_estimate=pl.CostEstimate(
            flops=flops, transcendentals=0, bytes_accessed=bytes_accessed
        ),
    )(w_taps, x_pad)

    # TODO(synk): for very long L (>> VMEM per-batch slab), add an L-tiled grid with
    # a 2-column halo; unnecessary for this module's h=512.
    return out if Lpad == L else out[:, :, :L]


def reference_conv_block(x, weight):
    """Pure-JAX reference (lax conv, NCL layout, highest precision)."""
    y = jax.lax.conv_general_dilated(
        x, weight,
        window_strides=(1,),
        padding=((1, 1),),
        dimension_numbers=("NCH", "OIH", "NCH"),
        precision=jax.lax.Precision.HIGHEST,
    )
    return jnp.where(y >= 0, y, 0.1 * y)


if __name__ == "__main__":
    key = jax.random.PRNGKey(0)
    kx1, kx2, kw = jax.random.split(key, 3)

    B, Cin, Cout = 2, 21, 32

    # PyTorch Conv1d default init: U(-bound, bound), bound = 1/sqrt(Cin * kernel_size)
    bound = 1.0 / np.sqrt(Cin * 3)
    weight = jax.random.uniform(
        kw, (Cout, Cin, 3), dtype=jnp.float32, minval=-bound, maxval=bound
    )

    # Test 1: exact f32-operand path at a small size (tight tolerance).
    L1 = 64
    x1 = jax.random.normal(kx1, (B, Cin, L1), dtype=jnp.float32)
    out1 = jax.block_until_ready(conv_block(x1, weight, compute_dtype=None))
    ref1 = jax.block_until_ready(reference_conv_block(x1, weight))
    assert out1.shape == (B, Cout, L1)
    np.testing.assert_allclose(np.asarray(out1), np.asarray(ref1), atol=1e-4, rtol=1e-4)

    # Test 2: default bf16-operand path at the module's spatial size (h=512).
    # Compare against an f32 reference run on bf16-rounded operands so only the
    # (tiny, f32-accumulated) ordering difference remains.
    L2 = 512
    x2 = jax.random.normal(kx2, (B, Cin, L2), dtype=jnp.float32)
    out2 = jax.block_until_ready(conv_block(x2, weight))
    xq = x2.astype(jnp.bfloat16).astype(jnp.float32)
    wq = weight.astype(jnp.bfloat16).astype(jnp.float32)
    ref2 = jax.block_until_ready(reference_conv_block(xq, wq))
    assert out2.shape == (B, Cout, L2)
    np.testing.assert_allclose(np.asarray(out2), np.asarray(ref2), atol=2e-3, rtol=2e-3)

    print("KERNEL_OK")
</pallas_src>

<mosaic_0001>
module attributes {stable_mosaic.version = 11 : i64} {
  func.func @_conv_block_kernel(%arg0: i32, %arg1: memref<3x32x21xf32, #tpu.memory_space<vmem>>, %arg2: memref<1x21x130xf32, #tpu.memory_space<vmem>>, %arg3: memref<1x32x128xf32, #tpu.memory_space<vmem>>) attributes {dimension_semantics = [#tpu.dimension_semantics<parallel>], iteration_bounds = array<i64: 2>, scalar_prefetch = 0 : i64, scratch_operands = 0 : i64, tpu.core_type = #tpu.core_type<tc>, window_params = [{pipeline_mode = #tpu.pipeline_mode<synchronous>, transform_indices = @transform_0, window_bounds = array<i64: 3, 32, 21>}, {transform_indices = @transform_1, window_bounds = array<i64: 1, 21, 130>}, {transform_indices = @transform_2, window_bounds = array<i64: 1, 32, 128>}]} {
    %c0 = arith.constant 0 : index
    %c0_0 = arith.constant 0 : index
    %c0_1 = arith.constant 0 : index
    %0 = vector.load %arg1[%c0, %c0_0, %c0_1] : memref<3x32x21xf32, #tpu.memory_space<vmem>>, vector<1x32x21xf32>
    %1 = vector.shape_cast %0 : vector<1x32x21xf32> to vector<32x21xf32>
    %c0_2 = arith.constant 0 : index
    %c0_3 = arith.constant 0 : index
    %c0_4 = arith.constant 0 : index
    %2 = vector.load %arg2[%c0_2, %c0_3, %c0_4] : memref<1x21x130xf32, #tpu.memory_space<vmem>>, vector<1x21x128xf32>
    %3 = vector.shape_cast %2 : vector<1x21x128xf32> to vector<21x128xf32>
    %cst = arith.constant dense<0.000000e+00> : vector<32x128xf32>
    %4 = tpu.matmul %1, %3, %cst {dimension_numbers = #tpu.dot_dimension_numbers<[1], [0], [0], [1], [0, 0, 1, 1], [], []>} : vector<32x21xf32>, vector<21x128xf32>, vector<32x128xf32> -> vector<32x128xf32>
    %c1 = arith.constant 1 : index
    %c0_5 = arith.constant 0 : index
    %c0_6 = arith.constant 0 : index
    %5 = vector.load %arg1[%c1, %c0_5, %c0_6] : memref<3x32x21xf32, #tpu.memory_space<vmem>>, vector<1x32x21xf32>
    %6 = vector.shape_cast %5 : vector<1x32x21xf32> to vector<32x21xf32>
    %c0_7 = arith.constant 0 : index
    %c0_8 = arith.constant 0 : index
    %c1_9 = arith.constant 1 : index
    %7 = vector.load %arg2[%c0_7, %c0_8, %c1_9] : memref<1x21x130xf32, #tpu.memory_space<vmem>>, vector<1x21x128xf32>
    %8 = vector.shape_cast %7 : vector<1x21x128xf32> to vector<21x128xf32>
    %cst_10 = arith.constant dense<0.000000e+00> : vector<32x128xf32>
    %9 = tpu.matmul %6, %8, %cst_10 {dimension_numbers = #tpu.dot_dimension_numbers<[1], [0], [0], [1], [0, 0, 1, 1], [], []>} : vector<32x21xf32>, vector<21x128xf32>, vector<32x128xf32> -> vector<32x128xf32>
    %10 = arith.addf %4, %9 : vector<32x128xf32>
    %c2 = arith.constant 2 : index
    %c0_11 = arith.constant 0 : index
    %c0_12 = arith.constant 0 : index
    %11 = vector.load %arg1[%c2, %c0_11, %c0_12] : memref<3x32x21xf32, #tpu.memory_space<vmem>>, vector<1x32x21xf32>
    %12 = vector.shape_cast %11 : vector<1x32x21xf32> to vector<32x21xf32>
    %c0_13 = arith.constant 0 : index
    %c0_14 = arith.constant 0 : index
    %c2_15 = arith.constant 2 : index
    %13 = vector.load %arg2[%c0_13, %c0_14, %c2_15] : memref<1x21x130xf32, #tpu.memory_space<vmem>>, vector<1x21x128xf32>
    %14 = vector.shape_cast %13 : vector<1x21x128xf32> to vector<21x128xf32>
    %cst_16 = arith.constant dense<0.000000e+00> : vector<32x128xf32>
    %15 = tpu.matmul %12, %14, %cst_16 {dimension_numbers = #tpu.dot_dimension_numbers<[1], [0], [0], [1], [0, 0, 1, 1], [], []>} : vector<32x21xf32>, vector<21x128xf32>, vector<32x128xf32> -> vector<32x128xf32>
    %16 = arith.addf %10, %15 : vector<32x128xf32>
    %cst_17 = arith.constant 1.000000e-01 : f32
    %17 = vector.broadcast %cst_17 : f32 to vector<32x128xf32>
    %18 = arith.mulf %17, %16 : vector<32x128xf32>
    %19 = arith.maximumf %16, %18 : vector<32x128xf32>
    %c0_18 = arith.constant 0 : index
    %c0_19 = arith.constant 0 : index
    %c0_20 = arith.constant 0 : index
    %20 = vector.load %arg3[%c0_18, %c0_19, %c0_20] : memref<1x32x128xf32, #tpu.memory_space<vmem>>, vector<1x32x128xf32>
    %21 = vector.shape_cast %20 : vector<1x32x128xf32> to vector<32x128xf32>
    %22 = vector.shape_cast %19 : vector<32x128xf32> to vector<1x32x128xf32>
    tpu.vector_store %arg3[%c0_18, %c0_19, %c0_20], %22 {strides = array<i32>} : memref<1x32x128xf32, #tpu.memory_space<vmem>>, vector<1x32x128xf32>,
    return
  }
  func.func @transform_0(%arg0: i32) -> (i32, i32, i32) {
    %c0_i32 = arith.constant 0 : i32
    %c0_i32_0 = arith.constant 0 : i32
    %c0_i32_1 = arith.constant 0 : i32
    %c0_i32_2 = arith.constant 0 : i32
    return %c0_i32, %c0_i32_0, %c0_i32_1 : i32, i32, i32
  }
  func.func @transform_1(%arg0: i32) -> (i32, i32, i32) {
    %c0_i32 = arith.constant 0 : i32
    %c0_i32_0 = arith.constant 0 : i32
    %c0_i32_1 = arith.constant 0 : i32
    return %arg0, %c0_i32, %c0_i32_0 : i32, i32, i32
  }
  func.func @transform_2(%arg0: i32) -> (i32, i32, i32) {
    %c0_i32 = arith.constant 0 : i32
    %c0_i32_0 = arith.constant 0 : i32
    %c0_i32_1 = arith.constant 0 : i32
    return %arg0, %c0_i32, %c0_i32_0 : i32, i32, i32
  }
}

</mosaic_0001>

<bundles_post_ra>
// kernel: tpu_custom_call.1
= control target key start
LH: loop header
LB: loop body
LE: loop exit
PB: predicated region body
PF: predicated region fallthrough
CT: control target
= control target key end

     0   :  { %7 = vsyncpa [#allocation3], 0  ;;  %s1028_s0 = inlined_call_operand.vmem [shape: f32[3,32,21], index: 0, kind: input, shape index: {}]   ;;  %s1029_s1 = inlined_call_operand.vmem [shape: f32[2,21,130], index: 1, kind: input, shape index: {}]   ;;  %s1030_s2 = inlined_call_operand.hbm [shape: f32[2,32,128], index: 2, kind: output, shape index: {}]  }
   0x1   :  { %9 = vsyncpa [#allocation3 + $0x1], 0  ;;  %s859_s9 = smov 0   ;;  %s861_s10 = smov 0  }
   0x2   :  { %s863_s11 = smov 0   ;;  %s865_s12 = smov 0  }
   0x3 LB: > { %s880_s13 = sadd.s32 4294967295, %s837_s12   ;;  %s595_s14 = sadd.s32 4294967294, %s837_s12   ;;  %s837_s12 = sphi %s865_s12, %s1036_s12   ;;  %s833_s11 = sphi %s863_s11, %s1035_s11   ;;  %s829_s10 = sphi %s861_s10, %s1034_s10   ;;  %s825_s9 = sphi %s859_s9, %s1033_s9  }
   0x4   : > { %s884_s15 = sadd.s32 1, %s837_s12   ;;  %s69_s16 = sadd.s32 1, %s833_s11 }
   0x5   : > { %s66_s17 = ssub.s32 %s837_s12, %s884_s15  ;;  %p79_p0 = scmp.ne.s32.totalorder %s833_s11, %s829_s10 }
   0x6   : > { %p67_p1 = scmp.eq.s32.totalorder %s66_s17, 0  ;;  %p80_p2 = scmp.eq.s32.totalorder %s880_s13, 1 }
   0x7   : > { %p85_p3 = scmp.ne.s32.totalorder %s829_s10, %s825_s9  ;;  %p86_p4 = scmp.eq.s32.totalorder %s595_s14, 1 }
   0x8   : > { %s895_s18 = scalar_select %p67_p1, %s833_s11, %s69_s16  }
   0x9   : > { %p897_p5 = por %p80_p2, %p79_p0  ;;  %p901_p6 = por %p86_p4, %p85_p3 }
   0xa   : > { %p598_p7 = scmp.ge.s32.totalorder %s837_s12, 1  ;;  %p115_p8 = scmp.lt.s32.totalorder %s837_s12, 3 }
   0xc   : > { %p116_p9 = pnand %p598_p7, %p115_p8 }
   0xd   : > { %p137_p10 = scmp.lt.s32.totalorder (!%p116_p9), %s880_s13, 1  ;;  %v142_v0 = vld [vmem:[%s1028_s0] sm:$0xff] (!%p116_p9)  ;;  %vm181_vm0 = vcmask (!%p116_p9), 171008   ;;  %s839_s28 = smov (!%p116_p9), 127   ;;  %vm194_vm1 = vcmask (!%p116_p9), 1044480   ;;  %v143_v11 = vld [vmem:[%s1028_s0 + $0x8] sm:$0xff] (!%p116_p9) }
   0xe   : > { %119 = sbr.rel (%p116_p9) target bundleno = 402 (0x192), region = 28  ;;  %669 = vmatprep.mubr.msk.f32.mxu0 (!%p116_p9), %vm181_vm0, %v142_v0  ;;  %v601_v10 = vld [vmem:[%s1028_s0 + $0x20] sm:$0xff] (!%p116_p9)  ;;  %v144_v12 = vld [vmem:[%s1028_s0 + $0x10] sm:$0xff] (!%p116_p9)  ;;  %s840_s7 = smov (!%p116_p9), 126   ;;  %v145_v13 = vld [vmem:[%s1028_s0 + $0x18] sm:$0xff] (!%p116_p9)  ;;  %vm175_vm2 = vcmask (!%p116_p9), 1039360  }
   0xf   : > { %657 = vmatprep.mubr.msk.f32.mxu1 (!%p116_p9), %vm181_vm0, %v601_v10  ;;  %v615_v14 = vld [vmem:[%s1028_s0 + $0x40] sm:$0xff] (!%p116_p9)  ;;  %vm398_vm3 = vcmask (!%p116_p9), 1031168   ;;  %v602_v38 = vld [vmem:[%s1028_s0 + $0x28] sm:$0xff] (!%p116_p9)  ;;  %v603_v40 = vld [vmem:[%s1028_s0 + $0x30] sm:$0xff] (!%p116_p9)  ;;  %s134_s5 = sand.u32 (!%p116_p9), 1, %s829_s10   ;;  %s629_s14 = sshll.u32 (!%p116_p9), %s880_s13, 9 }
  0x10   : > { %v604_v41 = vld [vmem:[%s1028_s0 + $0x38] sm:$0xff] (!%p116_p9)  ;;  %v616_v42 = vld [vmem:[%s1028_s0 + $0x48] sm:$0xff] (!%p116_p9)  ;;  %v617_v43 = vld [vmem:[%s1028_s0 + $0x50] sm:$0xff] (!%p116_p9)  ;;  %s599_s6 = sshll.u32 (!%p116_p9), %s134_s5, 5  ;;  %s841_s23 = smov (!%p116_p9), [#allocation2]  }
  0x11   : > { %v618_v44 = vld [vmem:[%s1028_s0 + $0x58] sm:$0xff] (!%p116_p9)  ;;  %s779_s24 = sshll.u32 (!%p116_p9), %s841_s23, 4  ;;  %s780_s24 = int_to_ptr.vmem [resolvable:$false] %s779_s24 }
  0x15   : > { %s138_s21 = scalar_select %p137_p10, %s880_s13, 1 }
  0x16   : > { %s987_s13 = scalar_lea.sflag [#allocation3], %s134_s5 }
  0x17   : > { %s711_s22 = smul.u32 48, %s138_s21  ;;  %s983_s21 = scalar_lea.hbm %s1030_s2, %s629_s14 }
  0x19   : > { %s141_s25 = scalar_lea.vmem %s1029_s1, %s711_s22 }
  0x1a   : > { %v148_v1 = vld [vmem:[%s141_s25 + $0x20] sm:$0x1f]  ;;  %v154_v3 = vld [vmem:[%s141_s25 + $0x8] sm:$0xff]  ;;  %v147_v5 = vld [vmem:[%s141_s25 + $0x10] sm:$0xff] }
  0x1b   : > { %v146_v2 = vld [vmem:[%s141_s25] sm:$0xff]  ;;  %171 = vrot.lane.b32.xlu1 %v148_v1, %s839_s28  ;;  %v155_v6 = vld [vmem:[%s141_s25 + $0x18] sm:$0xff]  ;;  %v156_v7 = vld [vmem:[%s141_s25 + $0x28] sm:$0x1f]  ;;  %s781_s25 = scalar_lea.vmem %s780_s24, 1024 }
  0x1c   : > { %v755_v4 = vpack.i.bf16 %v154_v3, %v146_v2  ;;  %v691_v8 = vpack.c.bf16 %v147_v5, %v146_v2  ;;  %v760_v9 = vpack.i.bf16 %v155_v6, %v147_v5 }
  0x1e   : > { %756 = vrot.lane.b32.xlu0 %v755_v4, %s839_s28  ;;  %692 = vmatprep.subr.bf16.mxu0 %v691_v8 }
  0x1f   : > { %173 = vrot.lane.b32.xlu1 %v156_v7, %s839_s28  ;;  %694 = vmatpush3.bf16.msra.mxu0 %v691_v8 }
  0x20   : > { %667 = vmatprep.subr.msk.mxu0 %vm194_vm1, %v148_v1 }
  0x22   : > { %761 = vrot.lane.b32.xlu0 %v760_v9, %s839_s28 }
  0x23   : > { %771 = vrot.lane.b32.xlu1 %v760_v9, %s840_s7  ;;  %668 = vmatpush3.msk.msra.mxu0 %vm194_vm1, %v148_v1 }
  0x24   : > { %670 = vmatmul.mubr.msk.f32.vlgmr.msra.gmra.mrb[0].mxu0 %vm181_vm0, %v143_v11 }
  0x25   : > { %672 = vmatprep.mubr.msk.f32.mxu0 %vm181_vm0, %v144_v12 }
  0x26   : > { %766 = vrot.lane.b32.xlu0 %v755_v4, %s840_s7 }
  0x27   : > { %396 = vrot.lane.b32.xlu1 %v156_v7, %s840_s7 }
  0x28   : > { %673 = vmatmul.mubr.msk.f32.gmra.mrb[2].mxu0 %vm181_vm0, %v145_v13 }
  0x29   : > { %681 = vmatprep.mubr.msk.f32.mxu0 %vm181_vm0, %v615_v14 }
  0x2a   : > { %394 = vrot.lane.b32.xlu0 %v148_v1, %s840_s7  ;;  %s136_s7 = scalar_lea.vmem [#allocation2], %s599_s6 }
  0x2b   : > { %s533_s8 = sshll.u32 %s136_s7, 4  ;;  %s978_s8 = int_to_ptr.vmem [resolvable:$true] %s533_s8 }
  0x2c   : > { %s775_s22 = scalar_lea.vmem %s978_s8, 512  ;;  %p782_p0 = scmp.lt.s32.totalorder %s978_s8, %s780_s24 }
  0x2d   : > { %p776_p11 = scmp.ne.s32.totalorder %s978_s8, %s775_s22  ;;  %p783_p1 = scmp.lt.s32.totalorder %s781_s25, %s775_s22 }
  0x2f   : > { %p777_p12 = pnand %p776_p11, %p897_p5  ;;  %p784_p2 = por %p783_p1, %p782_p0 }
  0x31   : > { %p778_p13 = pneg %p777_p12 }
  0x33   : > { %p785_p3 = pnand %p784_p2, %p778_p13 }
  0x8d   : > { %v172_v15 = vpop.permute.xlu1 %171 }
  0x90   : > { %v757_v16 = vpop.permute.xlu0 %756 }
  0x91   : > { %v174_v17 = vpop.permute.xlu1 %173  ;;  %v759_v18 = vunpack.i.h.bf16 %v757_v16  ;;  %v758_v19 = vunpack.i.l.bf16 %v757_v16 }
  0x92   : > { %v178_v33 = vsel %vm175_vm2, %v172_v15, %v174_v17 }
  0x93   : > { %v176_v26 = vsel %vm175_vm2, %v758_v19, %v759_v18 }
  0x94   : > { %v762_v20 = vpop.permute.xlu0 %761 }
  0x95   : > { %v764_v21 = vunpack.i.h.bf16 %v762_v20  ;;  %v763_v22 = vunpack.i.l.bf16 %v762_v20  ;;  %v772_v23 = vpop.permute.xlu1 %771 }
  0x96   : > { %v774_v24 = vunpack.i.h.bf16 %v772_v23  ;;  %v773_v25 = vunpack.i.l.bf16 %v772_v23 }
  0x97   : > { %v177_v27 = vsel %vm175_vm2, %v763_v22, %v764_v21 }
  0x98   : > { %v767_v28 = vpop.permute.xlu0 %766  ;;  %v687_v29 = vpack.c.bf16 %v177_v27, %v176_v26  ;;  %v400_v30 = vsel %vm398_vm3, %v773_v25, %v774_v24 }
  0x99   : > { %v769_v31 = vunpack.i.h.bf16 %v767_v28  ;;  %v768_v32 = vunpack.i.l.bf16 %v767_v28  ;;  %v397_v35 = vpop.permute.xlu1 %396 }
  0x9a   : > { %688 = vmatprep.subr.bf16.mxu1 %v687_v29 }
  0x9b   : > { %v399_v34 = vsel %vm398_vm3, %v768_v32, %v769_v31  ;;  %690 = vmatpush3.bf16.msra.mxu1 %v687_v29 }
  0x9c   : > { %v695_v36 = vpack.c.bf16 %v400_v30, %v399_v34  ;;  %655 = vmatprep.subr.msk.mxu1 %vm194_vm1, %v178_v33  ;;  %v395_v37 = vpop.permute.xlu0 %394 }
  0x9d   : > { %v401_v39 = vsel %vm398_vm3, %v395_v37, %v397_v35 }
  0x9e   : > { %696 = vmatprep.subr.bf16.mxu0 %v695_v36 }
  0x9f   : > { %656 = vmatpush3.msk.msra.mxu1 %vm194_vm1, %v178_v33  ;;  %698 = vmatpush3.bf16.msra.mxu0 %v695_v36 }
  0xa0   : > { %658 = vmatmul.mubr.msk.f32.vlgmr.msra.gmra.mrb[0].mxu1 %vm181_vm0, %v602_v38  ;;  %699 = vmatprep.subr.bf16.mxu1 %v695_v36 }
  0xa1   : > { %701 = vmatpush3.bf16.msra.mxu1 %v695_v36  ;;  %679 = vmatprep.subr.msk.mxu0 %vm194_vm1, %v401_v39 }
  0xa2   : > { %660 = vmatprep.mubr.msk.f32.mxu1 %vm181_vm0, %v603_v40  ;;  %700 = vmatprep.subr.msk.mxu1 %vm194_vm1, %v401_v39 }
  0xa3   : > { %680 = vmatpush3.msk.msra.mxu0 %vm194_vm1, %v401_v39 }
  0xa4   : > { %661 = vmatmul.mubr.msk.f32.gmra.mrb[2].mxu1 %vm181_vm0, %v604_v41  ;;  %682 = vmatmul.mubr.msk.f32.vlgmr.msra.gmra.mrb[0].mxu0 %vm181_vm0, %v616_v42 }
  0xa5   : > { %702 = vmatpush3.msk.msra.mxu1 %vm194_vm1, %v401_v39  ;;  %684 = vmatprep.mubr.msk.f32.mxu1 %vm181_vm0, %v617_v43 }
  0xa8   : > { %685 = vmatmul.mubr.msk.f32.vlgmr.msra.gmra.mrb[4].mxu1 %vm181_vm0, %v618_v44 }
  0xfb   : > { %v674_v45 = vpop.f32.mrb[2].mxu0 }
  0xfc   : > { %v372_v46 = vpop.f32.mrb[3].mxu0 }
 0x173   : > { %v659_v47 = vpop.f32.mrb[0].mxu1 }
 0x174   : > { %v263_v48 = vpop.f32.mrb[1].mxu1 }
 0x177   : > { %v662_v49 = vpop.f32.mrb[2].mxu1  ;;  %v683_v50 = vpop.f32.mrb[0].mxu0 }
 0x178   : > { %v378_v51 = vadd.f32 %v674_v45, %v662_v49  ;;  %v703_v52 = vadd.f32 %v683_v50, %v659_v47  ;;  %v273_v53 = vpop.f32.mrb[3].mxu1  ;;  %v484_v54 = vpop.f32.mrb[1].mxu0 }
 0x179   : > { %v373_v55 = vadd.f32 %v372_v46, %v273_v53  ;;  %v704_v56 = vadd.f32 %v484_v54, %v263_v48 }
 0x17a   : > { %v508_v57 = vmul.f32 0.1, %v703_v52 }
 0x17b   : > { %v507_v58 = vmul.f32 0.1, %v704_v56  ;;  %v686_v59 = vpop.f32.mrb[4].mxu1 }
 0x17c   : > { %v512_v60 = vmax.f32 %v703_v52, %v508_v57  ;;  %v506_v61 = vadd.f32 %v686_v59, %v378_v51  ;;  %v494_v62 = vpop.f32.mrb[5].mxu1 }
 0x17d   : > { %v511_v63 = vmax.f32 %v704_v56, %v507_v58  ;;  %v505_v0 = vadd.f32 %v494_v62, %v373_v55 }
 0x17e   : > { %516 = vst [vmem:[%s136_s7 + $0x8] sm:$0xff] %v512_v60  ;;  %v510_v1 = vmul.f32 0.1, %v506_v61 }
 0x17f   : > { %515 = vst [vmem:[%s136_s7] sm:$0xff] %v511_v63  ;;  %v509_v2 = vmul.f32 0.1, %v505_v0 }
 0x180   : > { %v514_v3 = vmax.f32 %v506_v61, %v510_v1 }
 0x181   : > { %v513_v4 = vmax.f32 %v505_v0, %v509_v2 }
 0x182   : > { %518 = vst [vmem:[%s136_s7 + $0x18] sm:$0xff] %v514_v3 }
 0x183   : > { %517 = vst [vmem:[%s136_s7 + $0x10] sm:$0xff] %v513_v4 }
 0x184   : > { %788 = shalt.err (!%p785_p3)
}
 0x185   : > { %s789_s26 = scalar_lea.hbm %s983_s21, 512  ;;  %s793_s29 = scalar_lea.hbm %s1030_s2, 1024 }
 0x186   : > { %p790_p4 = scmp.ne.s32.totalorder %s983_s21, %s789_s26  ;;  %p794_p9 = scmp.lt.u32.totalorder %s983_s21, %s1030_s2 }
 0x187   : > { %p795_p10 = scmp.lt.u32.totalorder %s793_s29, %s789_s26  ;;  %p797_p12 = scmp.lt.u32.totalorder %s789_s26, %s983_s21 }
 0x188   : > { %p791_p7 = pnand %p790_p4, %p897_p5 }
 0x189   : > { %p796_p11 = por %p795_p10, %p794_p9 }
 0x18a   : > { %p792_p8 = pneg %p791_p7 }
 0x18b   : > { %p798_p13 = por %p797_p12, %p796_p11 }
 0x18d   : > { %p799_p0 = pnand %p798_p13, %p792_p8 }
 0x18f   : > { %802 = shalt.err (!%p799_p0)
}
 0x190   : > { %s842_s4 = smov 128   ;;  %s843_s5 = smov 8  }
 0x191   : > { %712 = dma.vmem_to_hbm [thread:$0]  (%p897_p5), %s978_s8, 512, %s983_s21, %s987_s13, %s842_s4, %s842_s4, %s843_s5  }
 0x192 PF: > { %p718_p1 = scmp.ge.s32.totalorder %s837_s12, 2  ;;  %s548_s6 = sand.u32 1, %s825_s9  }
 0x193   : > { %s549_s7 = scalar_lea.sflag [#allocation3], %s548_s6 }
 0x194   : > { %p715_p2 = pnand %p718_p1, %p901_p6 }
 0x196   : > { %820 = dma.done.wait (!%p715_p2), %s549_s7, 512  }
 0x197   : > { %822 = vsyncadd (!%p715_p2), %s549_s7, 4294966784  ;;  %p12_p3 = scmp.ge.s32.totalorder %s884_s15, 4   ;;  %s1033_s9 = smov %s829_s10 }
 0x198   : > { %s1034_s10 = smov %s833_s11  ;;  %s1035_s11 = smov %s895_s18 }
 0x199   : > { %s1036_s12 = smov %s884_s15  ;;  %14 = sbr.rel (!%p12_p3) target bundleno = 3 (0x3), region = 65 }
 0x1a0   :  { %554 = vsyncpa [#allocation3], 1 }
 0x1a1   :  { %556 = vsyncpa [#allocation3 + $0x1], 1 }

</bundles_post_ra>
